<compile_context>
chip_gen: v6e
topology: v6e:2x2x1
jax: 0.10.0
libtpu: 0.0.40
codegen_flags: <defaults>
</compile_context>

<pallas_src>
import jax
import jax.numpy as jnp
from jax.experimental import pallas as pl
from jax.experimental.pallas import tpu as pltpu


def _mlp_kernel(x_ref, w1_ref, b1_ref, w2_ref, b2_ref, o_ref):
    # x_ref : [tb, D]  f32 (VMEM)     w1_ref: [D, Hp] bf16 (VMEM, resident)
    # b1_ref: [1, Hp]  f32 (VMEM)     w2_ref: [1, Hp] f32  (VMEM, resident)
    # b2_ref: (1,)     f32 (SMEM)     o_ref : [tb, 1] f32  (VMEM)
    # In-kernel f32->bf16 cast of the activation stream (saves an extra HBM
    # pass vs. casting in the wrapper); MXU matmul accumulates in f32.
    x_bf = x_ref[...].astype(jnp.bfloat16)
    h = jnp.dot(x_bf, w1_ref[...], preferred_element_type=jnp.float32)
    # Bias + ReLU in f32 on the VPU (v5e has no bf16 VALU/EUP).
    # TODO(synk): on v6e/v7x this elementwise block could run in bf16 to halve
    #             the tb*Hp live intermediate; kept f32 for v5e portability.
    h = jnp.maximum(h + b1_ref[...], 0.0)
    # Second Linear has out_features == 1: VPU multiply + XLU lane reduction
    # instead of a degenerate 1-wide MXU matmul.
    logits = jnp.sum(h * w2_ref[...], axis=-1, keepdims=True) + b2_ref[0]
    # TODO(synk): output kept as a (tb, 1) column block (masked 1-lane store);
    #             a lane-dense (1, tb) row layout needs a column->row relayout
    #             in-kernel — deferred since the output stream is tiny here.
    o_ref[...] = jax.nn.sigmoid(logits)


def _ceil_to(n, m):
    return ((n + m - 1) // m) * m


def _vmem_limit_bytes():
    # Generation-aware scoped-VMEM budget: ~half the physical VMEM
    # (128 MiB on v5e/v6e -> 64 MiB limit; 64 MiB on v7x -> 32 MiB limit).
    try:
        cap = getattr(pltpu.get_tpu_info(), "vmem_capacity_bytes", None)
        if cap:
            return int(min(cap // 2, 64 * 1024 * 1024))
    except Exception:
        pass
    return 32 * 1024 * 1024


def _choose_tiling(batch, d, hp, vmem_limit_bytes):
    """Return (batch_tile, padded_batch).

    Byte-targeted (~2 MiB x blocks), bounded by the f32 hidden temp and the
    VMEM budget, >=2 grid programs when batch >= 16 (v7x dual TC), preferring
    an exact 8-aligned divisor of batch so no padding copy of x is needed.
    """
    b8 = _ceil_to(max(batch, 1), 8)
    target_x_bytes = 2 << 20                       # ~2 MiB block: near HBM roofline
    per_row_bytes = 2 * 4 * d + 4 * hp + 4         # 2x f32 x bufs + f32 hidden + out
    budget = max(vmem_limit_bytes // 2, 1 << 20)   # leave headroom for residents
    tb = min(target_x_bytes // (4 * d), budget // per_row_bytes)
    tb = max(8, (tb // 8) * 8)
    if batch >= 16:
        # Guarantee >=2 grid programs so "parallel" shards across v7x's 2 TCs.
        tb = min(tb, max(8, (pl.cdiv(batch, 2) // 8) * 8))
    tb = min(tb, b8)
    # Prefer an 8-aligned exact divisor of batch near the target: zero padding.
    for cand in range(tb, 7, -8):
        if batch % cand == 0 and cand * 2 >= tb:
            return cand, batch
    # Otherwise split evenly and pad batch minimally to a multiple of the tile.
    ngrid = pl.cdiv(b8, tb)
    tb = _ceil_to(pl.cdiv(b8, ngrid), 8)
    return tb, ngrid * tb


def simple_nn_forward(x, w1, b1, w2_row, b2):
    """x: [B, D] f32; w1: [D, H]; b1: [1, H]; w2_row: [1, H]; b2: [1, 1].

    Returns probs with shape [B, 1] (f32).
    """
    B, D = x.shape
    H = w1.shape[1]
    Hp = _ceil_to(H, 128)                 # lane-dense hidden dim (weights only)

    vmem_limit = _vmem_limit_bytes()
    tb, Bp = _choose_tiling(B, D, Hp, vmem_limit)
    grid = (Bp // tb,)

    # Parameter prep (one-time / tiny): bf16 weights for the MXU, f32 biases,
    # hidden dim zero-padded to Hp.  x stays f32 — the cast happens in-kernel.
    w1_bf = jnp.pad(w1.astype(jnp.bfloat16), ((0, 0), (0, Hp - H)))
    b1_f = jnp.pad(b1.reshape(1, H).astype(jnp.float32), ((0, 0), (0, Hp - H)))
    w2_f = jnp.pad(w2_row.reshape(1, H).astype(jnp.float32), ((0, 0), (0, Hp - H)))
    b2_f = jnp.asarray(b2, jnp.float32).reshape(1)

    # TODO(synk): for very large D*Hp (w1 not fitting ~1/2 the VMEM budget, e.g.
    #             v7x with D=H>=4096) add a contraction (D) grid axis with an
    #             f32 VMEM accumulator instead of keeping all of w1 resident.
    resident_bytes = w1_bf.size * 2 + (b1_f.size + w2_f.size) * 4
    assert resident_bytes <= vmem_limit // 2, (
        "resident weights exceed the VMEM budget; tile the contraction axis")

    x_f = x.astype(jnp.float32)
    if Bp != B:
        x_f = jnp.pad(x_f, ((0, Bp - B), (0, 0)))

    cost = pl.CostEstimate(
        flops=2 * Bp * D * Hp + 4 * Bp * Hp,       # layer-1 matmul + layer-2 VPU
        transcendentals=Bp,                        # sigmoid
        bytes_accessed=(x_f.size * 4 + w1_bf.size * 2
                        + (b1_f.size + w2_f.size + b2_f.size + Bp) * 4),
    )

    out = pl.pallas_call(
        _mlp_kernel,
        out_shape=jax.ShapeDtypeStruct((Bp, 1), jnp.float32),
        grid=grid,
        in_specs=[
            # x: tiled over batch, default double-buffered pipeline.
            pl.BlockSpec((tb, D), lambda i: (i, 0)),
            # Resident operands: constant index map, single-buffered.
            pl.BlockSpec((D, Hp), lambda i: (0, 0), pipeline_mode=pl.Buffered(1)),
            pl.BlockSpec((1, Hp), lambda i: (0, 0), pipeline_mode=pl.Buffered(1)),
            pl.BlockSpec((1, Hp), lambda i: (0, 0), pipeline_mode=pl.Buffered(1)),
            # b2: single f32 scalar -> 1-D SMEM ref.
            pl.BlockSpec(memory_space=pltpu.MemorySpace.SMEM),
        ],
        out_specs=pl.BlockSpec((tb, 1), lambda i: (i, 0)),
        compiler_params=pltpu.CompilerParams(
            dimension_semantics=("parallel",),     # batch shards across TCs on v7x
            vmem_limit_bytes=vmem_limit,
        ),
        cost_estimate=cost,
    )(x_f, w1_bf, b1_f, w2_f, b2_f)

    return out[:B] if Bp != B else out


def init_params(key, input_size, hidden):
    k1, k2, k3, k4 = jax.random.split(key, 4)
    w1 = jax.random.normal(k1, (input_size, hidden), jnp.float32) * 0.1
    b1 = jax.random.normal(k2, (1, hidden), jnp.float32) * 0.1
    # Second Linear (out_features=1) stored as a [1, H] row for the VPU path.
    w2_row = jax.random.normal(k3, (1, hidden), jnp.float32) * 0.1
    b2 = jax.random.normal(k4, (1, 1), jnp.float32) * 0.1
    return w1, b1, w2_row, b2


def _reference_forward(x, w1, b1, w2_row, b2):
    h = jnp.maximum(x @ w1 + b1, 0.0)
    return jax.nn.sigmoid(h @ w2_row.T + b2)


if __name__ == "__main__":
    key = jax.random.PRNGKey(0)
    kx, kp = jax.random.split(key)

    batch, input_size, hidden = 8, 32, 32
    x = jax.random.normal(kx, (batch, input_size), jnp.float32)
    w1, b1, w2_row, b2 = init_params(kp, input_size, hidden)

    probs = simple_nn_forward(x, w1, b1, w2_row, b2)
    jax.block_until_ready(probs)

    # Sanity: shape, probability range, and agreement with a pure-JAX f32
    # reference (bf16 MXU inputs -> loose tolerance, documented).
    ref = _reference_forward(x, w1, b1, w2_row, b2)
    assert probs.shape == (batch, 1)
    assert bool(jnp.all((probs >= 0.0) & (probs <= 1.0)))
    assert bool(jnp.all(jnp.abs(probs - ref) < 1e-2))

    print("KERNEL_OK")
</pallas_src>

<mosaic_0001>
module attributes {stable_mosaic.version = 11 : i64} {
  func.func @_mlp_kernel(%arg0: i32, %arg1: memref<8x32xf32, #tpu.memory_space<vmem>>, %arg2: memref<32x128xbf16, #tpu.memory_space<vmem>>, %arg3: memref<1x128xf32, #tpu.memory_space<vmem>>, %arg4: memref<1x128xf32, #tpu.memory_space<vmem>>, %arg5: memref<1xf32, #tpu.memory_space<smem>>, %arg6: memref<8x1xf32, #tpu.memory_space<vmem>>) attributes {dimension_semantics = [#tpu.dimension_semantics<parallel>], iteration_bounds = array<i64: 1>, scalar_prefetch = 0 : i64, scratch_operands = 0 : i64, tpu.core_type = #tpu.core_type<tc>, window_params = [{transform_indices = @transform_0, window_bounds = array<i64: 8, 32>}, {pipeline_mode = #tpu.pipeline_mode<synchronous>, transform_indices = @transform_1, window_bounds = array<i64: 32, 128>}, {pipeline_mode = #tpu.pipeline_mode<synchronous>, transform_indices = @transform_2, window_bounds = array<i64: 1, 128>}, {pipeline_mode = #tpu.pipeline_mode<synchronous>, transform_indices = @transform_3, window_bounds = array<i64: 1, 128>}, {transform_indices = @transform_4, window_bounds = array<i64: 1>}, {transform_indices = @transform_5, window_bounds = array<i64: 8, 1>}]} {
    %c0 = arith.constant 0 : index
    %c0_0 = arith.constant 0 : index
    %0 = vector.load %arg1[%c0, %c0_0] : memref<8x32xf32, #tpu.memory_space<vmem>>, vector<8x32xf32>
    %1 = arith.truncf %0 : vector<8x32xf32> to vector<8x32xbf16>
    %c0_1 = arith.constant 0 : index
    %c0_2 = arith.constant 0 : index
    %2 = vector.load %arg2[%c0_1, %c0_2] : memref<32x128xbf16, #tpu.memory_space<vmem>>, vector<32x128xbf16>
    %cst = arith.constant dense<0.000000e+00> : vector<8x128xf32>
    %3 = tpu.matmul %1, %2, %cst {dimension_numbers = #tpu.dot_dimension_numbers<[1], [0], [0], [1], [0, 0, 1, 1], [], []>} : vector<8x32xbf16>, vector<32x128xbf16>, vector<8x128xf32> -> vector<8x128xf32>
    %c0_3 = arith.constant 0 : index
    %c0_4 = arith.constant 0 : index
    %4 = vector.load %arg3[%c0_3, %c0_4] : memref<1x128xf32, #tpu.memory_space<vmem>>, vector<1x128xf32>
    %5 = vector.broadcast %4 : vector<1x128xf32> to vector<8x128xf32>
    %6 = arith.addf %3, %5 : vector<8x128xf32>
    %cst_5 = arith.constant 0.000000e+00 : f32
    %7 = vector.broadcast %cst_5 : f32 to vector<8x128xf32>
    %8 = arith.maximumf %6, %7 : vector<8x128xf32>
    %c0_6 = arith.constant 0 : index
    %c0_7 = arith.constant 0 : index
    %9 = vector.load %arg4[%c0_6, %c0_7] : memref<1x128xf32, #tpu.memory_space<vmem>>, vector<1x128xf32>
    %10 = vector.broadcast %9 : vector<1x128xf32> to vector<8x128xf32>
    %11 = arith.mulf %8, %10 : vector<8x128xf32>
    %cst_8 = arith.constant dense<0.000000e+00> : vector<8xf32>
    %12 = vector.multi_reduction <add>, %11, %cst_8 [1] : vector<8x128xf32> to vector<8xf32>
    %13 = vector.shape_cast %12 : vector<8xf32> to vector<8x1xf32>
    %c0_9 = arith.constant 0 : index
    %14 = memref.load %arg5[%c0_9] : memref<1xf32, #tpu.memory_space<smem>>
    %15 = vector.broadcast %14 : f32 to vector<8x1xf32>
    %16 = arith.addf %13, %15 : vector<8x1xf32>
    %17 = arith.negf %16 : vector<8x1xf32>
    %18 = math.exp %17 : vector<8x1xf32>
    %cst_10 = arith.constant 1.000000e+00 : f32
    %19 = vector.broadcast %cst_10 : f32 to vector<8x1xf32>
    %20 = arith.addf %19, %18 : vector<8x1xf32>
    %21 = arith.divf %19, %20 : vector<8x1xf32>
    %c0_11 = arith.constant 0 : index
    %c0_12 = arith.constant 0 : index
    %22 = vector.load %arg6[%c0_11, %c0_12] : memref<8x1xf32, #tpu.memory_space<vmem>>, vector<8x1xf32>
    tpu.vector_store %arg6[%c0_11, %c0_12], %21 {strides = array<i32>} : memref<8x1xf32, #tpu.memory_space<vmem>>, vector<8x1xf32>,
    return
  }
  func.func @transform_0(%arg0: i32) -> (i32, i32) {
    %c0_i32 = arith.constant 0 : i32
    %c0_i32_0 = arith.constant 0 : i32
    return %arg0, %c0_i32 : i32, i32
  }
  func.func @transform_1(%arg0: i32) -> (i32, i32) {
    %c0_i32 = arith.constant 0 : i32
    %c0_i32_0 = arith.constant 0 : i32
    %c0_i32_1 = arith.constant 0 : i32
    return %c0_i32, %c0_i32_0 : i32, i32
  }
  func.func @transform_2(%arg0: i32) -> (i32, i32) {
    %c0_i32 = arith.constant 0 : i32
    %c0_i32_0 = arith.constant 0 : i32
    %c0_i32_1 = arith.constant 0 : i32
    return %c0_i32, %c0_i32_0 : i32, i32
  }
  func.func @transform_3(%arg0: i32) -> (i32, i32) {
    %c0_i32 = arith.constant 0 : i32
    %c0_i32_0 = arith.constant 0 : i32
    %c0_i32_1 = arith.constant 0 : i32
    return %c0_i32, %c0_i32_0 : i32, i32
  }
  func.func @transform_4(%arg0: i32) -> i32 {
    %c0_i32 = arith.constant 0 : i32
    %c0_i32_0 = arith.constant 0 : i32
    return %c0_i32 : i32
  }
  func.func @transform_5(%arg0: i32) -> (i32, i32) {
    %c0_i32 = arith.constant 0 : i32
    %c0_i32_0 = arith.constant 0 : i32
    return %arg0, %c0_i32 : i32, i32
  }
}

</mosaic_0001>

<bundles_post_ra>
// kernel: tpu_custom_call.1
= control target key start
LH: loop header
LB: loop body
LE: loop exit
PB: predicated region body
PF: predicated region fallthrough
CT: control target
= control target key end

     0   :  { %11 = vsyncpa [#allocation4], 0  ;;  %s272_s0 = inlined_call_operand.hbm [shape: f32[8,32], index: 0, kind: input, shape index: {}]   ;;  %s273_s1 = inlined_call_operand.hbm [shape: bf16[32,128], index: 1, kind: input, shape index: {}]   ;;  %s274_s2 = inlined_call_operand.vmem [shape: f32[1,128], index: 2, kind: input, shape index: {}]   ;;  %s275_s3 = inlined_call_operand.vmem [shape: f32[1,128], index: 3, kind: input, shape index: {}]   ;;  %s276_s4 = inlined_call_operand.<no memory space> [shape: f32[1], index: 4, kind: input, shape index: {}]   ;;  %s277_s5 = inlined_call_operand.vmem [shape: f32[8,1], index: 5, kind: output, shape index: {}]  }
   0x1   :  { %12 = vsyncpa [#allocation6], 0  ;;  %s218_s18 = smov [#allocation3]   ;;  %s219_s20 = smov [#allocation5]  }
   0x2   :  { %s19_s19 = sshll.u32 %s218_s18, 4  ;;  %s28_s21 = sshll.u32 %s219_s20, 4  ;;  %s20_s19 = int_to_ptr.vmem [resolvable:$true] %s19_s19  ;;  %s29_s21 = int_to_ptr.vmem [resolvable:$true] %s28_s21 }
   0x3   :  { %s182_s22 = scalar_lea.vmem %s20_s19, 128  ;;  %p187_p1 = scmp.lt.s32.totalorder %s20_s19, %s20_s19 }
   0x4   :  { %p183_p0 = scmp.ne.s32.totalorder %s20_s19, %s182_s22  ;;  %p188_p2 = scmp.lt.s32.totalorder %s182_s22, %s182_s22 }
   0x6   :  { %p189_p3 = por %p188_p2, %p187_p1 }
   0x8   :  { %p190_p4 = pnand %p189_p3, %p183_p0 }
   0xa   :  { %193 = shalt.err (!%p190_p4)
}
   0xb   :  { %22 = dma.hbm_to_vmem [thread:$0]  %s272_s0, 128, %s20_s19, [#allocation4]  }
   0xc   :  { %s202_s25 = scalar_lea.vmem %s29_s21, 256  ;;  %p207_p6 = scmp.lt.s32.totalorder %s29_s21, %s29_s21 }
   0xd   :  { %p203_p5 = scmp.ne.s32.totalorder %s29_s21, %s202_s25  ;;  %p208_p7 = scmp.lt.s32.totalorder %s202_s25, %s202_s25 }
   0xf   :  { %p209_p8 = por %p208_p7, %p207_p6 }
  0x11   :  { %p210_p9 = pnand %p209_p8, %p203_p5 }
  0x13   :  { %213 = shalt.err (!%p210_p9)
}
  0x14   :  { %s220_s26 = smov 64   ;;  %s221_s27 = smov 4  }
  0x15   :  { %34 = dma.hbm_to_vmem [thread:$0]  %s273_s1, 256, %s29_s21, [#allocation6], %s220_s26, %s220_s26, %s221_s27  }
  0x16   :  { %214 = dma.done.wait [#allocation4], 128  }
  0x17   :  { %215 = vsyncadd [#allocation4], 4294967168 }
  0x18   :  { %216 = dma.done.wait [#allocation6], 256  }
  0x19   :  { %217 = vsyncadd [#allocation6], 4294967040  ;;  %v222_v0 = vmov 0.0   ;;  %vm223_vm0 = vmmov 0   ;;  %v168_v1 = vld [vmem:[#allocation5 + $0x8] sm:$0xff]   ;;  %v169_v2 = vld [vmem:[#allocation5] sm:$0xff]   ;;  %v129_v14 = vstv %s276_s4 }
  0x1a   :  { %154 = vmatprep.subr.bf16.mxu0 %v222_v0  ;;  %158 = vmatprep.mubr.msk.bf16.mxu0 %vm223_vm0, %v222_v0  ;;  %v48_v3 = vld [vmem:[#allocation3] sm:$0xff]  ;;  %vm73_vm1 = vcmask 261120   ;;  %vm137_vm2 = vcmask 7168  }
  0x1b   :  { %155 = vmatpush3.bf16.msra.mxu0 %v168_v1  ;;  %v49_v4 = vpack.c.bf16 %v48_v3, %v48_v3  ;;  %v145_v5 = vld [vmem:[%s274_s2] ss:$0 sm:$0xff] }
  0x1c   :  { %156 = vmatprep.subr.bf16.mxu0 %v222_v0  ;;  %v149_v9 = vld [vmem:[%s275_s3] ss:$0 sm:$0xff] }
  0x1f   :  { %157 = vmatpush3.bf16.msra.mxu0 %v169_v2 }
  0x22   :  { %159 = vmatmul.mubr.msk.bf16.vlgmr.msra.gmra.mxu0 %vm73_vm1, %v49_v4 }
  0xe2   :  { %v111_v6 = vpop.f32.mrf.mxu0 }
  0xe3   :  { %v112_v7 = vadd.f32 %v145_v5, %v111_v6 }
  0xe4   :  { %v160_v8 = vpop.f32.mrf.mxu0 }
  0xe5   :  { %v117_v10 = vmax.f32 %v112_v7, 0.0 }
  0xe6   :  { %v114_v11 = vpop.f32.mrf.mxu0 }
  0xe7   :  { %v125_v12 = vmul.f32 %v149_v9, %v117_v10 }
  0xe8   :  { %v161_v13 = vpop.f32.mrf.mxu0 }
  0xe9   :  { %126 = vadd.xlane.f32.xlu0 %v125_v12 }
 0x172   :  { %v127_v15 = vpop.xlane.xlu0 %126 }
 0x173   :  { %v130_v16 = vadd.f32 %v129_v14, %v127_v15 }
 0x175   :  { %v150_v17 = vmul.f32 -1.442695, %v130_v16 }
 0x177   :  { %170 = vpow2.f32 %v150_v17 }
 0x184   :  { %v171_v18 = vpop.eup %170 }
 0x185   :  { %v134_v19 = vadd.f32 1.0, %v171_v18 }
 0x187   :  { %172 = vrcp.f32 %v134_v19 }
 0x194   :  { %v173_v20 = vpop.eup %172 }
 0x195   :  { %138 = vst.msk [vmem:[%s277_s5] sm:$0xff] %vm137_vm2, %v173_v20 }
 0x196   :  { %143 = vsyncpa [#allocation4], 1 }
 0x197   :  { %144 = vsyncpa [#allocation6], 1 }

</bundles_post_ra>
